<compile_context>
chip_gen: v7x
topology: tpu7x:2x2x1
jax: 0.10.0
libtpu: 0.0.40
codegen_flags: <defaults>
</compile_context>

<pallas_src>
import jax
import jax.numpy as jnp
from jax.experimental import pallas as pl
from jax.experimental.pallas import tpu as pltpu

LANE_W = 512                          # lane-dense width (4 full vregs of lanes)
MAX_BLOCK_BYTES = 2 * 1024 * 1024     # 2 MiB per block -> ~12 MiB double-buffered
MIN_GRID_STEPS = 8                    # pipeline depth + even split on v7x 2-TC
SMALL_BYPASS_BYTES = 2 * 1024 * 1024  # below this, fused XLA jnp.maximum wins


def _or_kernel(a_ref, b_ref, o_ref):
    # Elementwise maximum on the VPU over the current (block_rows, LANE_W) tile.
    o_ref[...] = jnp.maximum(a_ref[...], b_ref[...])


def _sublane_rows(dtype):
    # f32 -> 8, bf16 -> 16, int8/fp8 -> 32 (sub-32-bit dtypes pack along sublanes).
    itemsize = jnp.dtype(dtype).itemsize
    return max(8, 8 * (4 // max(1, itemsize)))


def or_module(attention_grid1, attention_grid2):
    """Elementwise max of two attention grids (same semantics as torch.max(a, b))."""
    assert attention_grid1.shape == attention_grid2.shape
    assert attention_grid1.dtype == attention_grid2.dtype
    orig_shape = attention_grid1.shape
    dtype = attention_grid1.dtype

    n = int(attention_grid1.size)
    itemsize = jnp.dtype(dtype).itemsize
    nbytes = n * itemsize
    sublane = _sublane_rows(dtype)

    lane_aligned = (n % LANE_W == 0)
    rows = n // LANE_W if lane_aligned else 0
    aligned = lane_aligned and rows > 0 and (rows % sublane == 0)

    # Bypass: tiny inputs (launch/DMA overhead dominates) or ragged sizes
    # (avoids full-array pad/slice copies; XLA fuses the max for free).
    if nbytes < SMALL_BYPASS_BYTES or not aligned:
        return jnp.maximum(attention_grid1, attention_grid2)

    a2d = attention_grid1.reshape(rows, LANE_W)
    b2d = attention_grid2.reshape(rows, LANE_W)

    # Block sizing: cap at 2 MiB (v5e-safe) while targeting >= MIN_GRID_STEPS blocks.
    max_block_rows = (MAX_BLOCK_BYTES // (LANE_W * itemsize)) // sublane * sublane
    max_block_rows = max(sublane, int(max_block_rows))
    target_rows = pl.cdiv(rows, MIN_GRID_STEPS)
    target_rows = pl.cdiv(target_rows, sublane) * sublane
    block_rows = int(min(max_block_rows, max(sublane, target_rows)))

    grid = (pl.cdiv(rows, block_rows),)
    block_spec = pl.BlockSpec((block_rows, LANE_W), lambda i: (i, 0))

    out2d = pl.pallas_call(
        _or_kernel,
        out_shape=jax.ShapeDtypeStruct((rows, LANE_W), dtype),
        grid_spec=pl.GridSpec(
            grid=grid,
            in_specs=[block_spec, block_spec],
            out_specs=block_spec,
        ),
        compiler_params=pltpu.CompilerParams(
            dimension_semantics=("parallel",),
        ),
        cost_estimate=pl.CostEstimate(
            flops=n, transcendentals=0, bytes_accessed=3 * nbytes),
    )(a2d, b2d)

    return out2d.reshape(orig_shape)


if __name__ == "__main__":
    key = jax.random.PRNGKey(0)
    k1, k2, k3, k4, k5, k6, k7, k8 = jax.random.split(key, 8)

    ok = True

    # 1) Small attention grids (NCHW) -> bypass path (plain jnp.maximum).
    a_small = jax.random.uniform(k1, (2, 4, 16, 16), dtype=jnp.float32)
    b_small = jax.random.uniform(k2, (2, 4, 16, 16), dtype=jnp.float32)
    out_small = jax.block_until_ready(or_module(a_small, b_small))
    ref_small = jnp.maximum(a_small, b_small)
    ok &= out_small.shape == ref_small.shape and out_small.dtype == ref_small.dtype
    ok &= bool(jnp.all(out_small == ref_small))

    # 2) Larger aligned grid -> Pallas path, >=8-step grid (f32).
    a_big = jax.random.uniform(k3, (2, 4, 384, 384), dtype=jnp.float32)
    b_big = jax.random.uniform(k4, (2, 4, 384, 384), dtype=jnp.float32)
    out_big = jax.block_until_ready(or_module(a_big, b_big))
    ref_big = jnp.maximum(a_big, b_big)
    ok &= out_big.shape == ref_big.shape and out_big.dtype == ref_big.dtype
    ok &= bool(jnp.all(out_big == ref_big))

    # 3) Odd-sized grid -> ragged, routed to bypass (no pad/slice copies).
    a_odd = jax.random.uniform(k5, (2, 3, 100, 100), dtype=jnp.float32)
    b_odd = jax.random.uniform(k6, (2, 3, 100, 100), dtype=jnp.float32)
    out_odd = jax.block_until_ready(or_module(a_odd, b_odd))
    ref_odd = jnp.maximum(a_odd, b_odd)
    ok &= out_odd.shape == ref_odd.shape and out_odd.dtype == ref_odd.dtype
    ok &= bool(jnp.all(out_odd == ref_odd))

    # 4) bf16 aligned grid -> Pallas path with dtype-aware (16-row) sublane tiling.
    a_bf = jax.random.uniform(k7, (2, 4, 512, 512), dtype=jnp.bfloat16)
    b_bf = jax.random.uniform(k8, (2, 4, 512, 512), dtype=jnp.bfloat16)
    out_bf = jax.block_until_ready(or_module(a_bf, b_bf))
    ref_bf = jnp.maximum(a_bf, b_bf)
    ok &= out_bf.shape == ref_bf.shape and out_bf.dtype == ref_bf.dtype
    ok &= bool(jnp.all(out_bf == ref_bf))

    assert ok
    print("KERNEL_OK")
</pallas_src>

<mosaic_0001>
module attributes {stable_mosaic.version = 11 : i64} {
  func.func @_or_kernel(%arg0: i32, %arg1: memref<288x512xf32, #tpu.memory_space<vmem>>, %arg2: memref<288x512xf32, #tpu.memory_space<vmem>>, %arg3: memref<288x512xf32, #tpu.memory_space<vmem>>) attributes {dimension_semantics = [#tpu.dimension_semantics<parallel>], iteration_bounds = array<i64: 8>, scalar_prefetch = 0 : i64, scratch_operands = 0 : i64, tpu.core_type = #tpu.core_type<tc>, window_params = [{transform_indices = @transform_0, window_bounds = array<i64: 288, 512>}, {transform_indices = @transform_1, window_bounds = array<i64: 288, 512>}, {transform_indices = @transform_2, window_bounds = array<i64: 288, 512>}]} {
    %c0 = arith.constant 0 : index
    %c0_0 = arith.constant 0 : index
    %0 = vector.load %arg1[%c0, %c0_0] : memref<288x512xf32, #tpu.memory_space<vmem>>, vector<288x512xf32>
    %c0_1 = arith.constant 0 : index
    %c0_2 = arith.constant 0 : index
    %1 = vector.load %arg2[%c0_1, %c0_2] : memref<288x512xf32, #tpu.memory_space<vmem>>, vector<288x512xf32>
    %2 = arith.maximumf %0, %1 : vector<288x512xf32>
    %c0_3 = arith.constant 0 : index
    %c0_4 = arith.constant 0 : index
    %3 = vector.load %arg3[%c0_3, %c0_4] : memref<288x512xf32, #tpu.memory_space<vmem>>, vector<288x512xf32>
    tpu.vector_store %arg3[%c0_3, %c0_4], %2 {strides = array<i32>} : memref<288x512xf32, #tpu.memory_space<vmem>>, vector<288x512xf32>,
    return
  }
  func.func @transform_0(%arg0: i32) -> (i32, i32) {
    %c0_i32 = arith.constant 0 : i32
    %c0_i32_0 = arith.constant 0 : i32
    return %arg0, %c0_i32 : i32, i32
  }
  func.func @transform_1(%arg0: i32) -> (i32, i32) {
    %c0_i32 = arith.constant 0 : i32
    %c0_i32_0 = arith.constant 0 : i32
    return %arg0, %c0_i32 : i32, i32
  }
  func.func @transform_2(%arg0: i32) -> (i32, i32) {
    %c0_i32 = arith.constant 0 : i32
    %c0_i32_0 = arith.constant 0 : i32
    return %arg0, %c0_i32 : i32, i32
  }
}

</mosaic_0001>

<bundles_post_ra>
// kernel: tpu_custom_call.1
= control target key start
LH: loop header
LB: loop body
LE: loop exit
PB: predicated region body
PF: predicated region fallthrough
CT: control target
= control target key end

     0   :  { %7 = vsyncpa [#allocation3], 0  ;;  %s1781_s0 = inlined_call_operand.hbm [shape: f32[2304,512], index: 0, kind: input, shape index: {}]   ;;  %s1782_s1 = inlined_call_operand.hbm [shape: f32[2304,512], index: 1, kind: input, shape index: {}]   ;;  %s1783_s2 = inlined_call_operand.hbm [shape: f32[2304,512], index: 2, kind: output, shape index: {}]  }
   0x1   :  { %9 = vsyncpa [#allocation3 + $0x1], 0 }
   0x2   :  { %10 = vsyncpa [#allocation6], 0 }
   0x3   :  { %12 = vsyncpa [#allocation6 + $0x1], 0 }
   0x4   :  { %13 = vsyncpa [#allocation4], 0 }
   0x5   :  { %15 = vsyncpa [#allocation4 + $0x1], 0  ;;  %s1127_s9 = smov 0   ;;  %s1129_s10 = smov 0  }
   0x6   :  { %s1131_s11 = smov 0   ;;  %s1133_s12 = smov 0  }
   0x7 LB: > { %s1148_s13 = sadd.s32 4294967295, %s1103_s12   ;;  %s894_s14 = sadd.s32 4294967294, %s1103_s12   ;;  %s1103_s12 = sphi %s1133_s12, %s1797_s12   ;;  %s1099_s11 = sphi %s1131_s11, %s1796_s11   ;;  %s1095_s10 = sphi %s1129_s10, %s1795_s10   ;;  %s1091_s9 = sphi %s1127_s9, %s1794_s9  }
   0x8   : > { %s1152_s15 = sadd.s32 1, %s1103_s12   ;;  %s28_s16 = sadd.s32 1, %s1099_s11 }
   0x9   : > { %s25_s17 = ssub.s32 %s1103_s12, %s1152_s15  ;;  %p35_p0 = scmp.ne.s32.totalorder %s1099_s11, %s1095_s10 }
   0xa   : > { %p26_p1 = scmp.eq.s32.totalorder %s25_s17, 0  ;;  %p36_p2 = scmp.eq.s32.totalorder %s1103_s12, 0 }
   0xb   : > { %p41_p3 = scmp.ne.s32.totalorder %s1095_s10, %s1091_s9  ;;  %p42_p4 = scmp.eq.s32.totalorder %s1148_s13, 0 }
   0xc   : > { %s1164_s18 = scalar_select %p26_p1, %s1099_s11, %s28_s16  }
   0xd   : > { %p37_p5 = por %p36_p2, %p35_p0  ;;  %p1166_p6 = por %p42_p4, %p41_p3 }
   0xe   : > { %p91_p7 = scmp.eq.s32.totalorder %s1148_s13, 7  ;;  %p97_p8 = scmp.eq.s32.totalorder %s894_s14, 7 }
   0xf   : > { %s1786_s19 = scalar_select %p1166_p6, 1, 0 }
  0x10   : > { %p935_p9 = scmp.lt.s32.totalorder %s1103_s12, 8  ;;  %p1172_p10 = por %p91_p7, %p35_p0 }
  0x11   : > { %p1176_p11 = por %p97_p8, %p41_p3  ;;  %s1181_s22 = sand.u32 1, %s1099_s11  }
  0x12   : > { %s1787_s20 = scalar_select %p1172_p10, 1, 0 }
  0x13   : > { %s1788_s21 = scalar_select %p1176_p11, 1, 0 }
  0x14   : > { %s912_s23 = smul.u32 18432, %s1103_s12  ;;  %p1192_p12 = pnand %p935_p9, %p37_p5 }
  0x15   : > { %s915_s24 = smul.u32 1152, %s1181_s22  ;;  %s118_s3 = scalar_lea.sflag [#allocation3], %s1181_s22 }
  0x16   : > { %s1190_s27 = scalar_lea.hbm %s1781_s0, %s912_s23  ;;  %p975_p0 = pneg %p1192_p12 }
  0x17   : > { %s121_s29 = scalar_lea.vmem [#allocation2], %s915_s24  ;;  %s973_s4 = scalar_lea.hbm %s1190_s27, 18432 }
  0x18   : > { %s129_s30 = sshll.u32 %s121_s29, 4  ;;  %p974_p13 = scmp.ne.s32.totalorder %s1190_s27, %s973_s4  ;;  %s1198_s30 = int_to_ptr.vmem [resolvable:$true] %s129_s30 }
  0x19   : > { %s978_s7 = scalar_lea.hbm %s1781_s0, 147456  ;;  %p979_p3 = scmp.lt.u32.totalorder %s1190_s27, %s1781_s0 }
  0x1a   : > { %p976_p1 = pnand %p975_p0, %p974_p13  ;;  %p980_p4 = scmp.lt.u32.totalorder %s978_s7, %s973_s4 }
  0x1b   : > { %p982_p7 = scmp.lt.u32.totalorder %s973_s4, %s1190_s27 }
  0x1c   : > { %p977_p2 = pneg %p976_p1  ;;  %p981_p5 = por %p980_p4, %p979_p3 }
  0x1e   : > { %p983_p8 = por %p982_p7, %p981_p5 }
  0x20   : > { %p984_p9 = pnand %p983_p8, %p977_p2 }
  0x22   : > { %987 = shalt.err (!%p984_p9)
}
  0x23   : > { %s988_s16 = scalar_lea.vmem %s1198_s30, 18432  ;;  %s1105_s17 = smov [#allocation2]  }
  0x24   : > { %p989_p13 = scmp.ne.s32.totalorder %s1198_s30, %s988_s16  ;;  %s993_s25 = sshll.u32 %s1105_s17, 4  ;;  %s994_s25 = int_to_ptr.vmem [resolvable:$false] %s993_s25 }
  0x25   : > { %s995_s26 = scalar_lea.vmem %s994_s25, 36864  ;;  %p996_p10 = scmp.lt.s32.totalorder %s1198_s30, %s994_s25 }
  0x26   : > { %p991_p1 = pnand %p989_p13, %p975_p0  ;;  %p997_p3 = scmp.lt.s32.totalorder %s995_s26, %s988_s16 }
  0x28   : > { %p992_p11 = pneg %p991_p1  ;;  %p998_p4 = por %p997_p3, %p996_p10 }
  0x2a   : > { %p999_p5 = pnand %p998_p4, %p992_p11 }
  0x2c   : > { %1002 = shalt.err (!%p999_p5)
}
  0x2d   : > { %s1106_s29 = smov 512   ;;  %s1107_s4 = smov 32  }
  0x2e   : > { %927 = dma.hbm_to_vmem [thread:$0]  (!%p1192_p12), %s1190_s27, 18432, %s1198_s30, %s118_s3, %s1106_s29, %s1106_s29, %s1107_s4  }
  0x2f   : > { %p901_p10 = scmp.ge.s32.totalorder %s1103_s12, 1  ;;  %p159_p11 = scmp.lt.s32.totalorder %s1103_s12, 9 }
  0x30   : > { %s1242_s8 = scalar_lea.hbm %s1782_s1, %s912_s23  ;;  %s143_s14 = scalar_lea.vmem [#allocation5], %s915_s24 }
  0x31   : > { %p1233_p2 = pnand %p901_p10, %p159_p11  ;;  %s151_s16 = sshll.u32 %s143_s14, 4  ;;  %s1246_s16 = int_to_ptr.vmem [resolvable:$true] %s151_s16 }
  0x32   : > { %s140_s27 = scalar_lea.sflag [#allocation6], %s1181_s22  ;;  %s1003_s30 = scalar_lea.hbm %s1242_s8, 18432 }
  0x33   : > { %p1004_p7 = scmp.ne.s32.totalorder %s1242_s8, %s1003_s30  ;;  %s1008_s23 = scalar_lea.hbm %s1782_s1, 147456 }
  0x34   : > { %p1009_p13 = scmp.lt.u32.totalorder %s1242_s8, %s1782_s1  ;;  %p1010_p1 = scmp.lt.u32.totalorder %s1008_s23, %s1003_s30 }
  0x35   : > { %p1006_p8 = pnand %p1004_p7, %p975_p0  ;;  %p1012_p4 = scmp.lt.u32.totalorder %s1003_s30, %s1242_s8 }
  0x36   : > { %p1011_p3 = por %p1010_p1, %p1009_p13 }
  0x37   : > { %p1007_p9 = pneg %p1006_p8 }
  0x38   : > { %p1013_p5 = por %p1012_p4, %p1011_p3 }
  0x3a   : > { %p1014_p10 = pnand %p1013_p5, %p1007_p9 }
  0x3c   : > { %1017 = shalt.err (!%p1014_p10)
}
  0x3d   : > { %s1018_s24 = scalar_lea.vmem %s1246_s16, 18432  ;;  %s1108_s6 = smov [#allocation5]  }
  0x3e   : > { %p1019_p11 = scmp.ne.s32.totalorder %s1246_s16, %s1018_s24  ;;  %s1023_s7 = sshll.u32 %s1108_s6, 4  ;;  %s1024_s7 = int_to_ptr.vmem [resolvable:$false] %s1023_s7 }
  0x3f   : > { %s1025_s14 = scalar_lea.vmem %s1024_s7, 36864  ;;  %p1026_p6 = scmp.lt.s32.totalorder %s1246_s16, %s1024_s7 }
  0x40   : > { %p1021_p7 = pnand %p1019_p11, %p975_p0  ;;  %p1027_p13 = scmp.lt.s32.totalorder %s1025_s14, %s1018_s24 }
  0x42   : > { %p1022_p8 = pneg %p1021_p7  ;;  %p1028_p1 = por %p1027_p13, %p1026_p6 }
  0x44   : > { %p1029_p3 = pnand %p1028_p1, %p1022_p8 }
  0x46   : > { %1032 = shalt.err (!%p1029_p3)
}
  0x47   : > { %930 = dma.hbm_to_vmem [thread:$0]  (!%p1192_p12), %s1242_s8, 18432, %s1246_s16, %s140_s27, %s1106_s29, %s1106_s29, %s1107_s4  }
  0x48   : > { %163 = sbr.rel (%p1233_p2) target bundleno = 211 (0xd3), region = 28  ;;  %s1280_s30 = sand.u32 (!%p1233_p2), 1, %s1095_s10  }
  0x49   : > { %s917_s3 = smul.u32 (!%p1233_p2), 1152, %s1280_s30  ;;  %s166_s17 = scalar_lea.sflag (!%p1233_p2), [#allocation3], %s1280_s30 }
  0x4a   : > { %p1791_p6 = scmp.ne.s32.totalorder (!%p1233_p2), %s1786_s19, 0 }
  0x4b   : > { %s1284_s28 = scalar_lea.vmem (!%p1233_p2), [#allocation2], %s917_s3 }
  0x4f   : > { %1078 = dma.done.wait (%p1791_p6), %s166_s17, 18432  }
  0x50   : > { %1080 = vsyncadd (%p1791_p6), %s166_s17, 4294948864  ;;  %s175_s22 = scalar_lea.sflag [#allocation6], %s1280_s30  ;;  %s1291_s29 = scalar_lea.vmem [#allocation5], %s917_s3 }
  0x51   : > { %1082 = dma.done.wait (%p1791_p6), %s175_s22, 18432  }
  0x52   : > { %1084 = vsyncadd (%p1791_p6), %s175_s22, 4294948864  ;;  %v207_v0 = vld [vmem:[%s1284_s28] sm:$0xff]  ;;  %v208_v2 = vld [vmem:[%s1284_s28 + $0x8] sm:$0xff]  ;;  %s1306_s19 = scalar_lea.vmem [#allocation7], %s917_s3  ;;  %s914_s4 = smul.u32 18432, %s1148_s13 }
  0x53   : > { %v351_v1 = vld [vmem:[%s1291_s29] sm:$0xff]  ;;  %v352_v4 = vld [vmem:[%s1291_s29 + $0x8] sm:$0xff]  ;;  %v209_v5 = vld [vmem:[%s1284_s28 + $0x10] sm:$0xff]  ;;  %s798_s5 = sshll.u32 %s1306_s19, 4  ;;  %s784_s27 = scalar_lea.sflag [#allocation4], %s1280_s30  ;;  %s1728_s5 = int_to_ptr.vmem [resolvable:$true] %s798_s5 }
  0x54   : > { %v495_v3 = vmax.f32 %v207_v0, %v351_v1  ;;  %v353_v6 = vld [vmem:[%s1291_s29 + $0x10] sm:$0xff]  ;;  %v496_v7 = vmax.f32 %v208_v2, %v352_v4  ;;  %v210_v9 = vld [vmem:[%s1284_s28 + $0x18] sm:$0xff]  ;;  %v211_v11 = vld [vmem:[%s1284_s28 + $0x20] sm:$0xff]  ;;  %s1735_s16 = scalar_lea.hbm %s1783_s2, %s914_s4  ;;  %s1033_s23 = scalar_lea.vmem %s1728_s5, 18432 }
  0x55   : > { %v497_v8 = vmax.f32 %v209_v5, %v353_v6  ;;  %v354_v10 = vld [vmem:[%s1291_s29 + $0x18] sm:$0xff]  ;;  %v355_v13 = vld [vmem:[%s1291_s29 + $0x20] sm:$0xff]  ;;  %v212_v14 = vld [vmem:[%s1284_s28 + $0x28] sm:$0xff]  ;;  %p1034_p12 = scmp.ne.s32.totalorder %s1728_s5, %s1033_s23  ;;  %p1792_p0 = scmp.ne.s32.totalorder %s1787_s20, 0 }
  0x56   : > { %639 = vst [vmem:[%s1306_s19] sm:$0xff] %v495_v3  ;;  %v498_v12 = vmax.f32 %v210_v9, %v354_v10  ;;  %v356_v15 = vld [vmem:[%s1291_s29 + $0x28] sm:$0xff]  ;;  %640 = vst [vmem:[%s1306_s19 + $0x8] sm:$0xff] %v496_v7  ;;  %v499_v16 = vmax.f32 %v211_v11, %v355_v13  ;;  %v213_v18 = vld [vmem:[%s1284_s28 + $0x30] sm:$0xff]  ;;  %s1109_s25 = smov [#allocation7]  }
  0x57   : > { %641 = vst [vmem:[%s1306_s19 + $0x10] sm:$0xff] %v497_v8  ;;  %v500_v17 = vmax.f32 %v212_v14, %v356_v15  ;;  %v357_v19 = vld [vmem:[%s1291_s29 + $0x30] sm:$0xff]  ;;  %v214_v20 = vld [vmem:[%s1284_s28 + $0x38] sm:$0xff]  ;;  %v215_v23 = vld [vmem:[%s1284_s28 + $0x40] sm:$0xff]  ;;  %p1035_p2 = pnand %p1034_p12, %p1792_p0  ;;  %s1037_s26 = sshll.u32 %s1109_s25, 4  ;;  %s1038_s26 = int_to_ptr.vmem [resolvable:$false] %s1037_s26 }
  0x58   : > { %642 = vst [vmem:[%s1306_s19 + $0x18] sm:$0xff] %v498_v12  ;;  %v501_v21 = vmax.f32 %v213_v18, %v357_v19  ;;  %v358_v22 = vld [vmem:[%s1291_s29 + $0x38] sm:$0xff]  ;;  %v359_v24 = vld [vmem:[%s1291_s29 + $0x40] sm:$0xff]  ;;  %643 = vst [vmem:[%s1306_s19 + $0x20] sm:$0xff] %v499_v16  ;;  %s1039_s24 = scalar_lea.vmem %s1038_s26, 36864  ;;  %p1040_p4 = scmp.lt.s32.totalorder %s1728_s5, %s1038_s26 }
  0x59   : > { %644 = vst [vmem:[%s1306_s19 + $0x28] sm:$0xff] %v500_v17  ;;  %v502_v25 = vmax.f32 %v214_v20, %v358_v22  ;;  %v503_v26 = vmax.f32 %v215_v23, %v359_v24  ;;  %v216_v27 = vld [vmem:[%s1284_s28 + $0x48] sm:$0xff]  ;;  %v217_v29 = vld [vmem:[%s1284_s28 + $0x50] sm:$0xff]  ;;  %v218_v32 = vld [vmem:[%s1284_s28 + $0x58] sm:$0xff]  ;;  %p1036_p9 = pneg %p1035_p2  ;;  %p1041_p5 = scmp.lt.s32.totalorder %s1039_s24, %s1033_s23 }
  0x5a   : > { %v360_v28 = vld [vmem:[%s1291_s29 + $0x48] sm:$0xff]  ;;  %645 = vst [vmem:[%s1306_s19 + $0x30] sm:$0xff] %v501_v21  ;;  %v361_v31 = vld [vmem:[%s1291_s29 + $0x50] sm:$0xff]  ;;  %v362_v33 = vld [vmem:[%s1291_s29 + $0x58] sm:$0xff] }
  0x5b   : > { %v504_v30 = vmax.f32 %v216_v27, %v360_v28  ;;  %646 = vst [vmem:[%s1306_s19 + $0x38] sm:$0xff] %v502_v25  ;;  %647 = vst [vmem:[%s1306_s19 + $0x40] sm:$0xff] %v503_v26  ;;  %v505_v34 = vmax.f32 %v217_v29, %v361_v31  ;;  %v506_v35 = vmax.f32 %v218_v32, %v362_v33  ;;  %v219_v36 = vld [vmem:[%s1284_s28 + $0x60] sm:$0xff]  ;;  %v220_v38 = vld [vmem:[%s1284_s28 + $0x68] sm:$0xff]  ;;  %p1042_p10 = por %p1041_p5, %p1040_p4 }
  0x5c   : > { %v363_v37 = vld [vmem:[%s1291_s29 + $0x60] sm:$0xff]  ;;  %v364_v40 = vld [vmem:[%s1291_s29 + $0x68] sm:$0xff]  ;;  %v221_v41 = vld [vmem:[%s1284_s28 + $0x70] sm:$0xff] }
  0x5d   : > { %648 = vst [vmem:[%s1306_s19 + $0x48] sm:$0xff] %v504_v30  ;;  %v507_v39 = vmax.f32 %v219_v36, %v363_v37  ;;  %v365_v42 = vld [vmem:[%s1291_s29 + $0x70] sm:$0xff]  ;;  %649 = vst [vmem:[%s1306_s19 + $0x50] sm:$0xff] %v505_v34  ;;  %v508_v43 = vmax.f32 %v220_v38, %v364_v40  ;;  %v222_v45 = vld [vmem:[%s1284_s28 + $0x78] sm:$0xff]  ;;  %p1043_p11 = pnand %p1042_p10, %p1036_p9 }
  0x5e   : > { %650 = vst [vmem:[%s1306_s19 + $0x58] sm:$0xff] %v506_v35  ;;  %v509_v44 = vmax.f32 %v221_v41, %v365_v42  ;;  %v366_v46 = vld [vmem:[%s1291_s29 + $0x78] sm:$0xff]  ;;  %v223_v47 = vld [vmem:[%s1284_s28 + $0x80] sm:$0xff]  ;;  %v224_v50 = vld [vmem:[%s1284_s28 + $0x88] sm:$0xff] }
  0x5f   : > { %651 = vst [vmem:[%s1306_s19 + $0x60] sm:$0xff] %v507_v39  ;;  %v510_v48 = vmax.f32 %v222_v45, %v366_v46  ;;  %v367_v49 = vld [vmem:[%s1291_s29 + $0x80] sm:$0xff]  ;;  %v368_v51 = vld [vmem:[%s1291_s29 + $0x88] sm:$0xff]  ;;  %652 = vst [vmem:[%s1306_s19 + $0x68] sm:$0xff] %v508_v43 }
  0x60   : > { %653 = vst [vmem:[%s1306_s19 + $0x70] sm:$0xff] %v509_v44  ;;  %v511_v52 = vmax.f32 %v223_v47, %v367_v49  ;;  %v512_v53 = vmax.f32 %v224_v50, %v368_v51  ;;  %v225_v54 = vld [vmem:[%s1284_s28 + $0x90] sm:$0xff]  ;;  %v226_v56 = vld [vmem:[%s1284_s28 + $0x98] sm:$0xff]  ;;  %v227_v59 = vld [vmem:[%s1284_s28 + $0xa0] sm:$0xff] }
  0x61   : > { %v369_v55 = vld [vmem:[%s1291_s29 + $0x90] sm:$0xff]  ;;  %654 = vst [vmem:[%s1306_s19 + $0x78] sm:$0xff] %v510_v48  ;;  %v370_v58 = vld [vmem:[%s1291_s29 + $0x98] sm:$0xff]  ;;  %v371_v60 = vld [vmem:[%s1291_s29 + $0xa0] sm:$0xff] }
  0x62   : > { %v513_v57 = vmax.f32 %v225_v54, %v369_v55  ;;  %655 = vst [vmem:[%s1306_s19 + $0x80] sm:$0xff] %v511_v52  ;;  %656 = vst [vmem:[%s1306_s19 + $0x88] sm:$0xff] %v512_v53  ;;  %v514_v61 = vmax.f32 %v226_v56, %v370_v58  ;;  %v515_v62 = vmax.f32 %v227_v59, %v371_v60  ;;  %v228_v63 = vld [vmem:[%s1284_s28 + $0xa8] sm:$0xff]  ;;  %v229_v1 = vld [vmem:[%s1284_s28 + $0xb0] sm:$0xff] }
  0x63   : > { %v372_v0 = vld [vmem:[%s1291_s29 + $0xa8] sm:$0xff]  ;;  %v373_v3 = vld [vmem:[%s1291_s29 + $0xb0] sm:$0xff]  ;;  %v230_v4 = vld [vmem:[%s1284_s28 + $0xb8] sm:$0xff] }
  0x64   : > { %657 = vst [vmem:[%s1306_s19 + $0x90] sm:$0xff] %v513_v57  ;;  %v516_v2 = vmax.f32 %v228_v63, %v372_v0  ;;  %v374_v5 = vld [vmem:[%s1291_s29 + $0xb8] sm:$0xff]  ;;  %658 = vst [vmem:[%s1306_s19 + $0x98] sm:$0xff] %v514_v61  ;;  %v517_v6 = vmax.f32 %v229_v1, %v373_v3  ;;  %v231_v8 = vld [vmem:[%s1284_s28 + $0xc0] sm:$0xff] }
  0x65   : > { %659 = vst [vmem:[%s1306_s19 + $0xa0] sm:$0xff] %v515_v62  ;;  %v518_v7 = vmax.f32 %v230_v4, %v374_v5  ;;  %v375_v9 = vld [vmem:[%s1291_s29 + $0xc0] sm:$0xff]  ;;  %v232_v10 = vld [vmem:[%s1284_s28 + $0xc8] sm:$0xff]  ;;  %v233_v13 = vld [vmem:[%s1284_s28 + $0xd0] sm:$0xff] }
  0x66   : > { %660 = vst [vmem:[%s1306_s19 + $0xa8] sm:$0xff] %v516_v2  ;;  %v519_v11 = vmax.f32 %v231_v8, %v375_v9  ;;  %v376_v12 = vld [vmem:[%s1291_s29 + $0xc8] sm:$0xff]  ;;  %v377_v14 = vld [vmem:[%s1291_s29 + $0xd0] sm:$0xff]  ;;  %661 = vst [vmem:[%s1306_s19 + $0xb0] sm:$0xff] %v517_v6 }
  0x67   : > { %662 = vst [vmem:[%s1306_s19 + $0xb8] sm:$0xff] %v518_v7  ;;  %v520_v15 = vmax.f32 %v232_v10, %v376_v12  ;;  %v521_v16 = vmax.f32 %v233_v13, %v377_v14  ;;  %v234_v17 = vld [vmem:[%s1284_s28 + $0xd8] sm:$0xff]  ;;  %v235_v19 = vld [vmem:[%s1284_s28 + $0xe0] sm:$0xff]  ;;  %v236_v22 = vld [vmem:[%s1284_s28 + $0xe8] sm:$0xff] }
  0x68   : > { %v378_v18 = vld [vmem:[%s1291_s29 + $0xd8] sm:$0xff]  ;;  %663 = vst [vmem:[%s1306_s19 + $0xc0] sm:$0xff] %v519_v11  ;;  %v379_v21 = vld [vmem:[%s1291_s29 + $0xe0] sm:$0xff]  ;;  %v380_v23 = vld [vmem:[%s1291_s29 + $0xe8] sm:$0xff] }
  0x69   : > { %v522_v20 = vmax.f32 %v234_v17, %v378_v18  ;;  %664 = vst [vmem:[%s1306_s19 + $0xc8] sm:$0xff] %v520_v15  ;;  %665 = vst [vmem:[%s1306_s19 + $0xd0] sm:$0xff] %v521_v16  ;;  %v523_v24 = vmax.f32 %v235_v19, %v379_v21  ;;  %v524_v25 = vmax.f32 %v236_v22, %v380_v23  ;;  %v237_v26 = vld [vmem:[%s1284_s28 + $0xf0] sm:$0xff]  ;;  %v238_v28 = vld [vmem:[%s1284_s28 + $0xf8] sm:$0xff] }
  0x6a   : > { %v381_v27 = vld [vmem:[%s1291_s29 + $0xf0] sm:$0xff]  ;;  %v382_v30 = vld [vmem:[%s1291_s29 + $0xf8] sm:$0xff]  ;;  %v239_v31 = vld [vmem:[%s1284_s28 + $0x100] sm:$0xff] }
  0x6b   : > { %666 = vst [vmem:[%s1306_s19 + $0xd8] sm:$0xff] %v522_v20  ;;  %v525_v29 = vmax.f32 %v237_v26, %v381_v27  ;;  %v383_v32 = vld [vmem:[%s1291_s29 + $0x100] sm:$0xff]  ;;  %667 = vst [vmem:[%s1306_s19 + $0xe0] sm:$0xff] %v523_v24  ;;  %v526_v33 = vmax.f32 %v238_v28, %v382_v30  ;;  %v240_v35 = vld [vmem:[%s1284_s28 + $0x108] sm:$0xff] }
  0x6c   : > { %668 = vst [vmem:[%s1306_s19 + $0xe8] sm:$0xff] %v524_v25  ;;  %v527_v34 = vmax.f32 %v239_v31, %v383_v32  ;;  %v384_v36 = vld [vmem:[%s1291_s29 + $0x108] sm:$0xff]  ;;  %v241_v37 = vld [vmem:[%s1284_s28 + $0x110] sm:$0xff]  ;;  %v242_v40 = vld [vmem:[%s1284_s28 + $0x118] sm:$0xff] }
  0x6d   : > { %669 = vst [vmem:[%s1306_s19 + $0xf0] sm:$0xff] %v525_v29  ;;  %v528_v38 = vmax.f32 %v240_v35, %v384_v36  ;;  %v385_v39 = vld [vmem:[%s1291_s29 + $0x110] sm:$0xff]  ;;  %v386_v41 = vld [vmem:[%s1291_s29 + $0x118] sm:$0xff]  ;;  %670 = vst [vmem:[%s1306_s19 + $0xf8] sm:$0xff] %v526_v33 }
  0x6e   : > { %671 = vst [vmem:[%s1306_s19 + $0x100] sm:$0xff] %v527_v34  ;;  %v529_v42 = vmax.f32 %v241_v37, %v385_v39  ;;  %v530_v43 = vmax.f32 %v242_v40, %v386_v41  ;;  %v243_v44 = vld [vmem:[%s1284_s28 + $0x120] sm:$0xff]  ;;  %v244_v46 = vld [vmem:[%s1284_s28 + $0x128] sm:$0xff]  ;;  %v245_v49 = vld [vmem:[%s1284_s28 + $0x130] sm:$0xff] }
  0x6f   : > { %v387_v45 = vld [vmem:[%s1291_s29 + $0x120] sm:$0xff]  ;;  %672 = vst [vmem:[%s1306_s19 + $0x108] sm:$0xff] %v528_v38  ;;  %v388_v48 = vld [vmem:[%s1291_s29 + $0x128] sm:$0xff]  ;;  %v389_v50 = vld [vmem:[%s1291_s29 + $0x130] sm:$0xff] }
  0x70   : > { %v531_v47 = vmax.f32 %v243_v44, %v387_v45  ;;  %673 = vst [vmem:[%s1306_s19 + $0x110] sm:$0xff] %v529_v42  ;;  %674 = vst [vmem:[%s1306_s19 + $0x118] sm:$0xff] %v530_v43  ;;  %v532_v51 = vmax.f32 %v244_v46, %v388_v48  ;;  %v533_v52 = vmax.f32 %v245_v49, %v389_v50  ;;  %v246_v53 = vld [vmem:[%s1284_s28 + $0x138] sm:$0xff]  ;;  %v247_v55 = vld [vmem:[%s1284_s28 + $0x140] sm:$0xff] }
  0x71   : > { %v390_v54 = vld [vmem:[%s1291_s29 + $0x138] sm:$0xff]  ;;  %v391_v57 = vld [vmem:[%s1291_s29 + $0x140] sm:$0xff]  ;;  %v248_v58 = vld [vmem:[%s1284_s28 + $0x148] sm:$0xff] }
  0x72   : > { %675 = vst [vmem:[%s1306_s19 + $0x120] sm:$0xff] %v531_v47  ;;  %v534_v56 = vmax.f32 %v246_v53, %v390_v54  ;;  %v392_v59 = vld [vmem:[%s1291_s29 + $0x148] sm:$0xff]  ;;  %676 = vst [vmem:[%s1306_s19 + $0x128] sm:$0xff] %v532_v51  ;;  %v535_v60 = vmax.f32 %v247_v55, %v391_v57  ;;  %v249_v62 = vld [vmem:[%s1284_s28 + $0x150] sm:$0xff] }
  0x73   : > { %677 = vst [vmem:[%s1306_s19 + $0x130] sm:$0xff] %v533_v52  ;;  %v536_v61 = vmax.f32 %v248_v58, %v392_v59  ;;  %v393_v63 = vld [vmem:[%s1291_s29 + $0x150] sm:$0xff]  ;;  %v250_v0 = vld [vmem:[%s1284_s28 + $0x158] sm:$0xff]  ;;  %v251_v3 = vld [vmem:[%s1284_s28 + $0x160] sm:$0xff] }
  0x74   : > { %678 = vst [vmem:[%s1306_s19 + $0x138] sm:$0xff] %v534_v56  ;;  %v537_v1 = vmax.f32 %v249_v62, %v393_v63  ;;  %v394_v2 = vld [vmem:[%s1291_s29 + $0x158] sm:$0xff]  ;;  %v395_v4 = vld [vmem:[%s1291_s29 + $0x160] sm:$0xff]  ;;  %679 = vst [vmem:[%s1306_s19 + $0x140] sm:$0xff] %v535_v60 }
  0x75   : > { %680 = vst [vmem:[%s1306_s19 + $0x148] sm:$0xff] %v536_v61  ;;  %v538_v5 = vmax.f32 %v250_v0, %v394_v2  ;;  %v539_v6 = vmax.f32 %v251_v3, %v395_v4  ;;  %v252_v7 = vld [vmem:[%s1284_s28 + $0x168] sm:$0xff]  ;;  %v253_v9 = vld [vmem:[%s1284_s28 + $0x170] sm:$0xff]  ;;  %v254_v12 = vld [vmem:[%s1284_s28 + $0x178] sm:$0xff] }
  0x76   : > { %v396_v8 = vld [vmem:[%s1291_s29 + $0x168] sm:$0xff]  ;;  %681 = vst [vmem:[%s1306_s19 + $0x150] sm:$0xff] %v537_v1  ;;  %v397_v11 = vld [vmem:[%s1291_s29 + $0x170] sm:$0xff]  ;;  %v398_v13 = vld [vmem:[%s1291_s29 + $0x178] sm:$0xff] }
  0x77   : > { %v540_v10 = vmax.f32 %v252_v7, %v396_v8  ;;  %682 = vst [vmem:[%s1306_s19 + $0x158] sm:$0xff] %v538_v5  ;;  %683 = vst [vmem:[%s1306_s19 + $0x160] sm:$0xff] %v539_v6  ;;  %v541_v14 = vmax.f32 %v253_v9, %v397_v11  ;;  %v542_v15 = vmax.f32 %v254_v12, %v398_v13  ;;  %v255_v16 = vld [vmem:[%s1284_s28 + $0x180] sm:$0xff]  ;;  %v256_v18 = vld [vmem:[%s1284_s28 + $0x188] sm:$0xff] }
  0x78   : > { %v399_v17 = vld [vmem:[%s1291_s29 + $0x180] sm:$0xff]  ;;  %v400_v20 = vld [vmem:[%s1291_s29 + $0x188] sm:$0xff]  ;;  %v257_v21 = vld [vmem:[%s1284_s28 + $0x190] sm:$0xff] }
  0x79   : > { %684 = vst [vmem:[%s1306_s19 + $0x168] sm:$0xff] %v540_v10  ;;  %v543_v19 = vmax.f32 %v255_v16, %v399_v17  ;;  %v401_v22 = vld [vmem:[%s1291_s29 + $0x190] sm:$0xff]  ;;  %685 = vst [vmem:[%s1306_s19 + $0x170] sm:$0xff] %v541_v14  ;;  %v544_v23 = vmax.f32 %v256_v18, %v400_v20  ;;  %v258_v25 = vld [vmem:[%s1284_s28 + $0x198] sm:$0xff] }
  0x7a   : > { %686 = vst [vmem:[%s1306_s19 + $0x178] sm:$0xff] %v542_v15  ;;  %v545_v24 = vmax.f32 %v257_v21, %v401_v22  ;;  %v402_v26 = vld [vmem:[%s1291_s29 + $0x198] sm:$0xff]  ;;  %v259_v27 = vld [vmem:[%s1284_s28 + $0x1a0] sm:$0xff]  ;;  %v260_v30 = vld [vmem:[%s1284_s28 + $0x1a8] sm:$0xff] }
  0x7b   : > { %687 = vst [vmem:[%s1306_s19 + $0x180] sm:$0xff] %v543_v19  ;;  %v546_v28 = vmax.f32 %v258_v25, %v402_v26  ;;  %v403_v29 = vld [vmem:[%s1291_s29 + $0x1a0] sm:$0xff]  ;;  %v404_v31 = vld [vmem:[%s1291_s29 + $0x1a8] sm:$0xff]  ;;  %688 = vst [vmem:[%s1306_s19 + $0x188] sm:$0xff] %v544_v23 }
  0x7c   : > { %689 = vst [vmem:[%s1306_s19 + $0x190] sm:$0xff] %v545_v24  ;;  %v547_v32 = vmax.f32 %v259_v27, %v403_v29  ;;  %v548_v33 = vmax.f32 %v260_v30, %v404_v31  ;;  %v261_v34 = vld [vmem:[%s1284_s28 + $0x1b0] sm:$0xff]  ;;  %v262_v36 = vld [vmem:[%s1284_s28 + $0x1b8] sm:$0xff]  ;;  %v263_v39 = vld [vmem:[%s1284_s28 + $0x1c0] sm:$0xff] }
  0x7d   : > { %v405_v35 = vld [vmem:[%s1291_s29 + $0x1b0] sm:$0xff]  ;;  %690 = vst [vmem:[%s1306_s19 + $0x198] sm:$0xff] %v546_v28  ;;  %v406_v38 = vld [vmem:[%s1291_s29 + $0x1b8] sm:$0xff]  ;;  %v407_v40 = vld [vmem:[%s1291_s29 + $0x1c0] sm:$0xff] }
  0x7e   : > { %v549_v37 = vmax.f32 %v261_v34, %v405_v35  ;;  %691 = vst [vmem:[%s1306_s19 + $0x1a0] sm:$0xff] %v547_v32  ;;  %692 = vst [vmem:[%s1306_s19 + $0x1a8] sm:$0xff] %v548_v33  ;;  %v550_v41 = vmax.f32 %v262_v36, %v406_v38  ;;  %v551_v42 = vmax.f32 %v263_v39, %v407_v40  ;;  %v264_v43 = vld [vmem:[%s1284_s28 + $0x1c8] sm:$0xff]  ;;  %v265_v45 = vld [vmem:[%s1284_s28 + $0x1d0] sm:$0xff] }
  0x7f   : > { %v408_v44 = vld [vmem:[%s1291_s29 + $0x1c8] sm:$0xff]  ;;  %v409_v47 = vld [vmem:[%s1291_s29 + $0x1d0] sm:$0xff]  ;;  %v266_v48 = vld [vmem:[%s1284_s28 + $0x1d8] sm:$0xff] }
  0x80   : > { %693 = vst [vmem:[%s1306_s19 + $0x1b0] sm:$0xff] %v549_v37  ;;  %v552_v46 = vmax.f32 %v264_v43, %v408_v44  ;;  %v410_v49 = vld [vmem:[%s1291_s29 + $0x1d8] sm:$0xff]  ;;  %694 = vst [vmem:[%s1306_s19 + $0x1b8] sm:$0xff] %v550_v41  ;;  %v553_v50 = vmax.f32 %v265_v45, %v409_v47  ;;  %v267_v52 = vld [vmem:[%s1284_s28 + $0x1e0] sm:$0xff] }
  0x81   : > { %695 = vst [vmem:[%s1306_s19 + $0x1c0] sm:$0xff] %v551_v42  ;;  %v554_v51 = vmax.f32 %v266_v48, %v410_v49  ;;  %v411_v53 = vld [vmem:[%s1291_s29 + $0x1e0] sm:$0xff]  ;;  %v268_v54 = vld [vmem:[%s1284_s28 + $0x1e8] sm:$0xff]  ;;  %v269_v57 = vld [vmem:[%s1284_s28 + $0x1f0] sm:$0xff] }
  0x82   : > { %696 = vst [vmem:[%s1306_s19 + $0x1c8] sm:$0xff] %v552_v46  ;;  %v555_v55 = vmax.f32 %v267_v52, %v411_v53  ;;  %v412_v56 = vld [vmem:[%s1291_s29 + $0x1e8] sm:$0xff]  ;;  %v413_v58 = vld [vmem:[%s1291_s29 + $0x1f0] sm:$0xff]  ;;  %697 = vst [vmem:[%s1306_s19 + $0x1d0] sm:$0xff] %v553_v50 }
  0x83   : > { %698 = vst [vmem:[%s1306_s19 + $0x1d8] sm:$0xff] %v554_v51  ;;  %v556_v59 = vmax.f32 %v268_v54, %v412_v56  ;;  %v557_v60 = vmax.f32 %v269_v57, %v413_v58  ;;  %v270_v61 = vld [vmem:[%s1284_s28 + $0x1f8] sm:$0xff]  ;;  %v271_v63 = vld [vmem:[%s1284_s28 + $0x200] sm:$0xff]  ;;  %v272_v2 = vld [vmem:[%s1284_s28 + $0x208] sm:$0xff] }
  0x84   : > { %v414_v62 = vld [vmem:[%s1291_s29 + $0x1f8] sm:$0xff]  ;;  %699 = vst [vmem:[%s1306_s19 + $0x1e0] sm:$0xff] %v555_v55  ;;  %v415_v1 = vld [vmem:[%s1291_s29 + $0x200] sm:$0xff]  ;;  %v416_v3 = vld [vmem:[%s1291_s29 + $0x208] sm:$0xff] }
  0x85   : > { %v558_v0 = vmax.f32 %v270_v61, %v414_v62  ;;  %700 = vst [vmem:[%s1306_s19 + $0x1e8] sm:$0xff] %v556_v59  ;;  %701 = vst [vmem:[%s1306_s19 + $0x1f0] sm:$0xff] %v557_v60  ;;  %v559_v4 = vmax.f32 %v271_v63, %v415_v1  ;;  %v560_v5 = vmax.f32 %v272_v2, %v416_v3  ;;  %v273_v6 = vld [vmem:[%s1284_s28 + $0x210] sm:$0xff]  ;;  %v274_v8 = vld [vmem:[%s1284_s28 + $0x218] sm:$0xff] }
  0x86   : > { %v417_v7 = vld [vmem:[%s1291_s29 + $0x210] sm:$0xff]  ;;  %v418_v10 = vld [vmem:[%s1291_s29 + $0x218] sm:$0xff]  ;;  %v275_v11 = vld [vmem:[%s1284_s28 + $0x220] sm:$0xff] }
  0x87   : > { %702 = vst [vmem:[%s1306_s19 + $0x1f8] sm:$0xff] %v558_v0  ;;  %v561_v9 = vmax.f32 %v273_v6, %v417_v7  ;;  %v419_v12 = vld [vmem:[%s1291_s29 + $0x220] sm:$0xff]  ;;  %703 = vst [vmem:[%s1306_s19 + $0x200] sm:$0xff] %v559_v4  ;;  %v562_v13 = vmax.f32 %v274_v8, %v418_v10  ;;  %v276_v15 = vld [vmem:[%s1284_s28 + $0x228] sm:$0xff] }
  0x88   : > { %704 = vst [vmem:[%s1306_s19 + $0x208] sm:$0xff] %v560_v5  ;;  %v563_v14 = vmax.f32 %v275_v11, %v419_v12  ;;  %v420_v16 = vld [vmem:[%s1291_s29 + $0x228] sm:$0xff]  ;;  %v277_v17 = vld [vmem:[%s1284_s28 + $0x230] sm:$0xff]  ;;  %v278_v20 = vld [vmem:[%s1284_s28 + $0x238] sm:$0xff] }
  0x89   : > { %705 = vst [vmem:[%s1306_s19 + $0x210] sm:$0xff] %v561_v9  ;;  %v564_v18 = vmax.f32 %v276_v15, %v420_v16  ;;  %v421_v19 = vld [vmem:[%s1291_s29 + $0x230] sm:$0xff]  ;;  %v422_v21 = vld [vmem:[%s1291_s29 + $0x238] sm:$0xff]  ;;  %706 = vst [vmem:[%s1306_s19 + $0x218] sm:$0xff] %v562_v13 }
  0x8a   : > { %707 = vst [vmem:[%s1306_s19 + $0x220] sm:$0xff] %v563_v14  ;;  %v565_v22 = vmax.f32 %v277_v17, %v421_v19  ;;  %v566_v23 = vmax.f32 %v278_v20, %v422_v21  ;;  %v279_v24 = vld [vmem:[%s1284_s28 + $0x240] sm:$0xff]  ;;  %v280_v26 = vld [vmem:[%s1284_s28 + $0x248] sm:$0xff]  ;;  %v281_v29 = vld [vmem:[%s1284_s28 + $0x250] sm:$0xff] }
  0x8b   : > { %v423_v25 = vld [vmem:[%s1291_s29 + $0x240] sm:$0xff]  ;;  %708 = vst [vmem:[%s1306_s19 + $0x228] sm:$0xff] %v564_v18  ;;  %v424_v28 = vld [vmem:[%s1291_s29 + $0x248] sm:$0xff]  ;;  %v425_v30 = vld [vmem:[%s1291_s29 + $0x250] sm:$0xff] }
  0x8c   : > { %v567_v27 = vmax.f32 %v279_v24, %v423_v25  ;;  %709 = vst [vmem:[%s1306_s19 + $0x230] sm:$0xff] %v565_v22  ;;  %710 = vst [vmem:[%s1306_s19 + $0x238] sm:$0xff] %v566_v23  ;;  %v568_v31 = vmax.f32 %v280_v26, %v424_v28  ;;  %v569_v32 = vmax.f32 %v281_v29, %v425_v30  ;;  %v282_v33 = vld [vmem:[%s1284_s28 + $0x258] sm:$0xff]  ;;  %v283_v35 = vld [vmem:[%s1284_s28 + $0x260] sm:$0xff] }
  0x8d   : > { %v426_v34 = vld [vmem:[%s1291_s29 + $0x258] sm:$0xff]  ;;  %v427_v37 = vld [vmem:[%s1291_s29 + $0x260] sm:$0xff]  ;;  %v284_v38 = vld [vmem:[%s1284_s28 + $0x268] sm:$0xff] }
  0x8e   : > { %711 = vst [vmem:[%s1306_s19 + $0x240] sm:$0xff] %v567_v27  ;;  %v570_v36 = vmax.f32 %v282_v33, %v426_v34  ;;  %v428_v39 = vld [vmem:[%s1291_s29 + $0x268] sm:$0xff]  ;;  %712 = vst [vmem:[%s1306_s19 + $0x248] sm:$0xff] %v568_v31  ;;  %v571_v40 = vmax.f32 %v283_v35, %v427_v37  ;;  %v285_v42 = vld [vmem:[%s1284_s28 + $0x270] sm:$0xff] }
  0x8f   : > { %713 = vst [vmem:[%s1306_s19 + $0x250] sm:$0xff] %v569_v32  ;;  %v572_v41 = vmax.f32 %v284_v38, %v428_v39  ;;  %v429_v43 = vld [vmem:[%s1291_s29 + $0x270] sm:$0xff]  ;;  %v286_v44 = vld [vmem:[%s1284_s28 + $0x278] sm:$0xff]  ;;  %v287_v47 = vld [vmem:[%s1284_s28 + $0x280] sm:$0xff] }
  0x90   : > { %714 = vst [vmem:[%s1306_s19 + $0x258] sm:$0xff] %v570_v36  ;;  %v573_v45 = vmax.f32 %v285_v42, %v429_v43  ;;  %v430_v46 = vld [vmem:[%s1291_s29 + $0x278] sm:$0xff]  ;;  %v431_v48 = vld [vmem:[%s1291_s29 + $0x280] sm:$0xff]  ;;  %715 = vst [vmem:[%s1306_s19 + $0x260] sm:$0xff] %v571_v40 }
  0x91   : > { %716 = vst [vmem:[%s1306_s19 + $0x268] sm:$0xff] %v572_v41  ;;  %v574_v49 = vmax.f32 %v286_v44, %v430_v46  ;;  %v575_v50 = vmax.f32 %v287_v47, %v431_v48  ;;  %v288_v51 = vld [vmem:[%s1284_s28 + $0x288] sm:$0xff]  ;;  %v289_v53 = vld [vmem:[%s1284_s28 + $0x290] sm:$0xff]  ;;  %v290_v56 = vld [vmem:[%s1284_s28 + $0x298] sm:$0xff] }
  0x92   : > { %v432_v52 = vld [vmem:[%s1291_s29 + $0x288] sm:$0xff]  ;;  %717 = vst [vmem:[%s1306_s19 + $0x270] sm:$0xff] %v573_v45  ;;  %v433_v55 = vld [vmem:[%s1291_s29 + $0x290] sm:$0xff]  ;;  %v434_v57 = vld [vmem:[%s1291_s29 + $0x298] sm:$0xff] }
  0x93   : > { %v576_v54 = vmax.f32 %v288_v51, %v432_v52  ;;  %718 = vst [vmem:[%s1306_s19 + $0x278] sm:$0xff] %v574_v49  ;;  %719 = vst [vmem:[%s1306_s19 + $0x280] sm:$0xff] %v575_v50  ;;  %v577_v58 = vmax.f32 %v289_v53, %v433_v55  ;;  %v578_v59 = vmax.f32 %v290_v56, %v434_v57  ;;  %v291_v60 = vld [vmem:[%s1284_s28 + $0x2a0] sm:$0xff]  ;;  %v292_v62 = vld [vmem:[%s1284_s28 + $0x2a8] sm:$0xff] }
  0x94   : > { %v435_v61 = vld [vmem:[%s1291_s29 + $0x2a0] sm:$0xff]  ;;  %v436_v0 = vld [vmem:[%s1291_s29 + $0x2a8] sm:$0xff]  ;;  %v293_v1 = vld [vmem:[%s1284_s28 + $0x2b0] sm:$0xff] }
  0x95   : > { %720 = vst [vmem:[%s1306_s19 + $0x288] sm:$0xff] %v576_v54  ;;  %v579_v63 = vmax.f32 %v291_v60, %v435_v61  ;;  %v437_v2 = vld [vmem:[%s1291_s29 + $0x2b0] sm:$0xff]  ;;  %721 = vst [vmem:[%s1306_s19 + $0x290] sm:$0xff] %v577_v58  ;;  %v580_v3 = vmax.f32 %v292_v62, %v436_v0  ;;  %v294_v5 = vld [vmem:[%s1284_s28 + $0x2b8] sm:$0xff] }
  0x96   : > { %722 = vst [vmem:[%s1306_s19 + $0x298] sm:$0xff] %v578_v59  ;;  %v581_v4 = vmax.f32 %v293_v1, %v437_v2  ;;  %v438_v6 = vld [vmem:[%s1291_s29 + $0x2b8] sm:$0xff]  ;;  %v295_v7 = vld [vmem:[%s1284_s28 + $0x2c0] sm:$0xff]  ;;  %v296_v10 = vld [vmem:[%s1284_s28 + $0x2c8] sm:$0xff] }
  0x97   : > { %723 = vst [vmem:[%s1306_s19 + $0x2a0] sm:$0xff] %v579_v63  ;;  %v582_v8 = vmax.f32 %v294_v5, %v438_v6  ;;  %v439_v9 = vld [vmem:[%s1291_s29 + $0x2c0] sm:$0xff]  ;;  %v440_v11 = vld [vmem:[%s1291_s29 + $0x2c8] sm:$0xff]  ;;  %724 = vst [vmem:[%s1306_s19 + $0x2a8] sm:$0xff] %v580_v3 }
  0x98   : > { %725 = vst [vmem:[%s1306_s19 + $0x2b0] sm:$0xff] %v581_v4  ;;  %v583_v12 = vmax.f32 %v295_v7, %v439_v9  ;;  %v584_v13 = vmax.f32 %v296_v10, %v440_v11  ;;  %v297_v14 = vld [vmem:[%s1284_s28 + $0x2d0] sm:$0xff]  ;;  %v298_v16 = vld [vmem:[%s1284_s28 + $0x2d8] sm:$0xff]  ;;  %v299_v19 = vld [vmem:[%s1284_s28 + $0x2e0] sm:$0xff] }
  0x99   : > { %v441_v15 = vld [vmem:[%s1291_s29 + $0x2d0] sm:$0xff]  ;;  %726 = vst [vmem:[%s1306_s19 + $0x2b8] sm:$0xff] %v582_v8  ;;  %v442_v18 = vld [vmem:[%s1291_s29 + $0x2d8] sm:$0xff]  ;;  %v443_v20 = vld [vmem:[%s1291_s29 + $0x2e0] sm:$0xff] }
  0x9a   : > { %v585_v17 = vmax.f32 %v297_v14, %v441_v15  ;;  %727 = vst [vmem:[%s1306_s19 + $0x2c0] sm:$0xff] %v583_v12  ;;  %728 = vst [vmem:[%s1306_s19 + $0x2c8] sm:$0xff] %v584_v13  ;;  %v586_v21 = vmax.f32 %v298_v16, %v442_v18  ;;  %v587_v22 = vmax.f32 %v299_v19, %v443_v20  ;;  %v300_v23 = vld [vmem:[%s1284_s28 + $0x2e8] sm:$0xff]  ;;  %v301_v25 = vld [vmem:[%s1284_s28 + $0x2f0] sm:$0xff] }
  0x9b   : > { %v444_v24 = vld [vmem:[%s1291_s29 + $0x2e8] sm:$0xff]  ;;  %v445_v27 = vld [vmem:[%s1291_s29 + $0x2f0] sm:$0xff]  ;;  %v302_v28 = vld [vmem:[%s1284_s28 + $0x2f8] sm:$0xff] }
  0x9c   : > { %729 = vst [vmem:[%s1306_s19 + $0x2d0] sm:$0xff] %v585_v17  ;;  %v588_v26 = vmax.f32 %v300_v23, %v444_v24  ;;  %v446_v29 = vld [vmem:[%s1291_s29 + $0x2f8] sm:$0xff]  ;;  %730 = vst [vmem:[%s1306_s19 + $0x2d8] sm:$0xff] %v586_v21  ;;  %v589_v30 = vmax.f32 %v301_v25, %v445_v27  ;;  %v303_v32 = vld [vmem:[%s1284_s28 + $0x300] sm:$0xff] }
  0x9d   : > { %731 = vst [vmem:[%s1306_s19 + $0x2e0] sm:$0xff] %v587_v22  ;;  %v590_v31 = vmax.f32 %v302_v28, %v446_v29  ;;  %v447_v33 = vld [vmem:[%s1291_s29 + $0x300] sm:$0xff]  ;;  %v304_v34 = vld [vmem:[%s1284_s28 + $0x308] sm:$0xff]  ;;  %v305_v37 = vld [vmem:[%s1284_s28 + $0x310] sm:$0xff] }
  0x9e   : > { %732 = vst [vmem:[%s1306_s19 + $0x2e8] sm:$0xff] %v588_v26  ;;  %v591_v35 = vmax.f32 %v303_v32, %v447_v33  ;;  %v448_v36 = vld [vmem:[%s1291_s29 + $0x308] sm:$0xff]  ;;  %v449_v38 = vld [vmem:[%s1291_s29 + $0x310] sm:$0xff]  ;;  %733 = vst [vmem:[%s1306_s19 + $0x2f0] sm:$0xff] %v589_v30 }
  0x9f   : > { %734 = vst [vmem:[%s1306_s19 + $0x2f8] sm:$0xff] %v590_v31  ;;  %v592_v39 = vmax.f32 %v304_v34, %v448_v36  ;;  %v593_v40 = vmax.f32 %v305_v37, %v449_v38  ;;  %v306_v41 = vld [vmem:[%s1284_s28 + $0x318] sm:$0xff]  ;;  %v307_v43 = vld [vmem:[%s1284_s28 + $0x320] sm:$0xff]  ;;  %v308_v46 = vld [vmem:[%s1284_s28 + $0x328] sm:$0xff] }
  0xa0   : > { %v450_v42 = vld [vmem:[%s1291_s29 + $0x318] sm:$0xff]  ;;  %735 = vst [vmem:[%s1306_s19 + $0x300] sm:$0xff] %v591_v35  ;;  %v451_v45 = vld [vmem:[%s1291_s29 + $0x320] sm:$0xff]  ;;  %v452_v47 = vld [vmem:[%s1291_s29 + $0x328] sm:$0xff] }
  0xa1   : > { %v594_v44 = vmax.f32 %v306_v41, %v450_v42  ;;  %736 = vst [vmem:[%s1306_s19 + $0x308] sm:$0xff] %v592_v39  ;;  %737 = vst [vmem:[%s1306_s19 + $0x310] sm:$0xff] %v593_v40  ;;  %v595_v48 = vmax.f32 %v307_v43, %v451_v45  ;;  %v596_v49 = vmax.f32 %v308_v46, %v452_v47  ;;  %v309_v50 = vld [vmem:[%s1284_s28 + $0x330] sm:$0xff]  ;;  %v310_v52 = vld [vmem:[%s1284_s28 + $0x338] sm:$0xff] }
  0xa2   : > { %v453_v51 = vld [vmem:[%s1291_s29 + $0x330] sm:$0xff]  ;;  %v454_v54 = vld [vmem:[%s1291_s29 + $0x338] sm:$0xff]  ;;  %v311_v55 = vld [vmem:[%s1284_s28 + $0x340] sm:$0xff] }
  0xa3   : > { %738 = vst [vmem:[%s1306_s19 + $0x318] sm:$0xff] %v594_v44  ;;  %v597_v53 = vmax.f32 %v309_v50, %v453_v51  ;;  %v455_v56 = vld [vmem:[%s1291_s29 + $0x340] sm:$0xff]  ;;  %739 = vst [vmem:[%s1306_s19 + $0x320] sm:$0xff] %v595_v48  ;;  %v598_v57 = vmax.f32 %v310_v52, %v454_v54  ;;  %v312_v59 = vld [vmem:[%s1284_s28 + $0x348] sm:$0xff] }
  0xa4   : > { %740 = vst [vmem:[%s1306_s19 + $0x328] sm:$0xff] %v596_v49  ;;  %v599_v58 = vmax.f32 %v311_v55, %v455_v56  ;;  %v456_v60 = vld [vmem:[%s1291_s29 + $0x348] sm:$0xff]  ;;  %v313_v61 = vld [vmem:[%s1284_s28 + $0x350] sm:$0xff]  ;;  %v314_v0 = vld [vmem:[%s1284_s28 + $0x358] sm:$0xff] }
  0xa5   : > { %741 = vst [vmem:[%s1306_s19 + $0x330] sm:$0xff] %v597_v53  ;;  %v600_v62 = vmax.f32 %v312_v59, %v456_v60  ;;  %v457_v63 = vld [vmem:[%s1291_s29 + $0x350] sm:$0xff]  ;;  %v458_v1 = vld [vmem:[%s1291_s29 + $0x358] sm:$0xff]  ;;  %742 = vst [vmem:[%s1306_s19 + $0x338] sm:$0xff] %v598_v57 }
  0xa6   : > { %743 = vst [vmem:[%s1306_s19 + $0x340] sm:$0xff] %v599_v58  ;;  %v601_v2 = vmax.f32 %v313_v61, %v457_v63  ;;  %v602_v3 = vmax.f32 %v314_v0, %v458_v1  ;;  %v315_v4 = vld [vmem:[%s1284_s28 + $0x360] sm:$0xff]  ;;  %v316_v6 = vld [vmem:[%s1284_s28 + $0x368] sm:$0xff]  ;;  %v317_v9 = vld [vmem:[%s1284_s28 + $0x370] sm:$0xff] }
  0xa7   : > { %v459_v5 = vld [vmem:[%s1291_s29 + $0x360] sm:$0xff]  ;;  %744 = vst [vmem:[%s1306_s19 + $0x348] sm:$0xff] %v600_v62  ;;  %v460_v8 = vld [vmem:[%s1291_s29 + $0x368] sm:$0xff]  ;;  %v461_v10 = vld [vmem:[%s1291_s29 + $0x370] sm:$0xff] }
  0xa8   : > { %v603_v7 = vmax.f32 %v315_v4, %v459_v5  ;;  %745 = vst [vmem:[%s1306_s19 + $0x350] sm:$0xff] %v601_v2  ;;  %746 = vst [vmem:[%s1306_s19 + $0x358] sm:$0xff] %v602_v3  ;;  %v604_v11 = vmax.f32 %v316_v6, %v460_v8  ;;  %v605_v12 = vmax.f32 %v317_v9, %v461_v10  ;;  %v318_v13 = vld [vmem:[%s1284_s28 + $0x378] sm:$0xff]  ;;  %v319_v15 = vld [vmem:[%s1284_s28 + $0x380] sm:$0xff] }
  0xa9   : > { %v462_v14 = vld [vmem:[%s1291_s29 + $0x378] sm:$0xff]  ;;  %v463_v17 = vld [vmem:[%s1291_s29 + $0x380] sm:$0xff]  ;;  %v320_v18 = vld [vmem:[%s1284_s28 + $0x388] sm:$0xff] }
  0xaa   : > { %747 = vst [vmem:[%s1306_s19 + $0x360] sm:$0xff] %v603_v7  ;;  %v606_v16 = vmax.f32 %v318_v13, %v462_v14  ;;  %v464_v19 = vld [vmem:[%s1291_s29 + $0x388] sm:$0xff]  ;;  %748 = vst [vmem:[%s1306_s19 + $0x368] sm:$0xff] %v604_v11  ;;  %v607_v20 = vmax.f32 %v319_v15, %v463_v17  ;;  %v321_v22 = vld [vmem:[%s1284_s28 + $0x390] sm:$0xff] }
  0xab   : > { %749 = vst [vmem:[%s1306_s19 + $0x370] sm:$0xff] %v605_v12  ;;  %v608_v21 = vmax.f32 %v320_v18, %v464_v19  ;;  %v465_v23 = vld [vmem:[%s1291_s29 + $0x390] sm:$0xff]  ;;  %v322_v24 = vld [vmem:[%s1284_s28 + $0x398] sm:$0xff]  ;;  %v323_v27 = vld [vmem:[%s1284_s28 + $0x3a0] sm:$0xff] }
  0xac   : > { %750 = vst [vmem:[%s1306_s19 + $0x378] sm:$0xff] %v606_v16  ;;  %v609_v25 = vmax.f32 %v321_v22, %v465_v23  ;;  %v466_v26 = vld [vmem:[%s1291_s29 + $0x398] sm:$0xff]  ;;  %v467_v28 = vld [vmem:[%s1291_s29 + $0x3a0] sm:$0xff]  ;;  %751 = vst [vmem:[%s1306_s19 + $0x380] sm:$0xff] %v607_v20 }
  0xad   : > { %752 = vst [vmem:[%s1306_s19 + $0x388] sm:$0xff] %v608_v21  ;;  %v610_v29 = vmax.f32 %v322_v24, %v466_v26  ;;  %v611_v30 = vmax.f32 %v323_v27, %v467_v28  ;;  %v324_v31 = vld [vmem:[%s1284_s28 + $0x3a8] sm:$0xff]  ;;  %v325_v33 = vld [vmem:[%s1284_s28 + $0x3b0] sm:$0xff]  ;;  %v326_v36 = vld [vmem:[%s1284_s28 + $0x3b8] sm:$0xff] }
  0xae   : > { %v468_v32 = vld [vmem:[%s1291_s29 + $0x3a8] sm:$0xff]  ;;  %753 = vst [vmem:[%s1306_s19 + $0x390] sm:$0xff] %v609_v25  ;;  %v469_v35 = vld [vmem:[%s1291_s29 + $0x3b0] sm:$0xff]  ;;  %v470_v37 = vld [vmem:[%s1291_s29 + $0x3b8] sm:$0xff] }
  0xaf   : > { %v612_v34 = vmax.f32 %v324_v31, %v468_v32  ;;  %754 = vst [vmem:[%s1306_s19 + $0x398] sm:$0xff] %v610_v29  ;;  %755 = vst [vmem:[%s1306_s19 + $0x3a0] sm:$0xff] %v611_v30  ;;  %v613_v38 = vmax.f32 %v325_v33, %v469_v35  ;;  %v614_v39 = vmax.f32 %v326_v36, %v470_v37  ;;  %v327_v40 = vld [vmem:[%s1284_s28 + $0x3c0] sm:$0xff]  ;;  %v328_v42 = vld [vmem:[%s1284_s28 + $0x3c8] sm:$0xff] }
  0xb0   : > { %v471_v41 = vld [vmem:[%s1291_s29 + $0x3c0] sm:$0xff]  ;;  %v472_v44 = vld [vmem:[%s1291_s29 + $0x3c8] sm:$0xff]  ;;  %v329_v45 = vld [vmem:[%s1284_s28 + $0x3d0] sm:$0xff] }
  0xb1   : > { %756 = vst [vmem:[%s1306_s19 + $0x3a8] sm:$0xff] %v612_v34  ;;  %v615_v43 = vmax.f32 %v327_v40, %v471_v41  ;;  %v473_v46 = vld [vmem:[%s1291_s29 + $0x3d0] sm:$0xff]  ;;  %757 = vst [vmem:[%s1306_s19 + $0x3b0] sm:$0xff] %v613_v38  ;;  %v616_v47 = vmax.f32 %v328_v42, %v472_v44  ;;  %v330_v49 = vld [vmem:[%s1284_s28 + $0x3d8] sm:$0xff] }
  0xb2   : > { %758 = vst [vmem:[%s1306_s19 + $0x3b8] sm:$0xff] %v614_v39  ;;  %v617_v48 = vmax.f32 %v329_v45, %v473_v46  ;;  %v474_v50 = vld [vmem:[%s1291_s29 + $0x3d8] sm:$0xff]  ;;  %v331_v51 = vld [vmem:[%s1284_s28 + $0x3e0] sm:$0xff]  ;;  %v332_v54 = vld [vmem:[%s1284_s28 + $0x3e8] sm:$0xff] }
  0xb3   : > { %759 = vst [vmem:[%s1306_s19 + $0x3c0] sm:$0xff] %v615_v43  ;;  %v618_v52 = vmax.f32 %v330_v49, %v474_v50  ;;  %v475_v53 = vld [vmem:[%s1291_s29 + $0x3e0] sm:$0xff]  ;;  %v476_v55 = vld [vmem:[%s1291_s29 + $0x3e8] sm:$0xff]  ;;  %760 = vst [vmem:[%s1306_s19 + $0x3c8] sm:$0xff] %v616_v47 }
  0xb4   : > { %761 = vst [vmem:[%s1306_s19 + $0x3d0] sm:$0xff] %v617_v48  ;;  %v619_v56 = vmax.f32 %v331_v51, %v475_v53  ;;  %v620_v57 = vmax.f32 %v332_v54, %v476_v55  ;;  %v333_v58 = vld [vmem:[%s1284_s28 + $0x3f0] sm:$0xff]  ;;  %v334_v60 = vld [vmem:[%s1284_s28 + $0x3f8] sm:$0xff]  ;;  %v335_v63 = vld [vmem:[%s1284_s28 + $0x400] sm:$0xff] }
  0xb5   : > { %v477_v59 = vld [vmem:[%s1291_s29 + $0x3f0] sm:$0xff]  ;;  %762 = vst [vmem:[%s1306_s19 + $0x3d8] sm:$0xff] %v618_v52  ;;  %v478_v62 = vld [vmem:[%s1291_s29 + $0x3f8] sm:$0xff]  ;;  %v479_v0 = vld [vmem:[%s1291_s29 + $0x400] sm:$0xff] }
  0xb6   : > { %v621_v61 = vmax.f32 %v333_v58, %v477_v59  ;;  %763 = vst [vmem:[%s1306_s19 + $0x3e0] sm:$0xff] %v619_v56  ;;  %764 = vst [vmem:[%s1306_s19 + $0x3e8] sm:$0xff] %v620_v57  ;;  %v622_v1 = vmax.f32 %v334_v60, %v478_v62  ;;  %v623_v2 = vmax.f32 %v335_v63, %v479_v0  ;;  %v336_v3 = vld [vmem:[%s1284_s28 + $0x408] sm:$0xff]  ;;  %v337_v5 = vld [vmem:[%s1284_s28 + $0x410] sm:$0xff] }
  0xb7   : > { %v480_v4 = vld [vmem:[%s1291_s29 + $0x408] sm:$0xff]  ;;  %v481_v7 = vld [vmem:[%s1291_s29 + $0x410] sm:$0xff]  ;;  %v338_v8 = vld [vmem:[%s1284_s28 + $0x418] sm:$0xff] }
  0xb8   : > { %765 = vst [vmem:[%s1306_s19 + $0x3f0] sm:$0xff] %v621_v61  ;;  %v624_v6 = vmax.f32 %v336_v3, %v480_v4  ;;  %v482_v9 = vld [vmem:[%s1291_s29 + $0x418] sm:$0xff]  ;;  %766 = vst [vmem:[%s1306_s19 + $0x3f8] sm:$0xff] %v622_v1  ;;  %v625_v10 = vmax.f32 %v337_v5, %v481_v7  ;;  %v339_v12 = vld [vmem:[%s1284_s28 + $0x420] sm:$0xff] }
  0xb9   : > { %767 = vst [vmem:[%s1306_s19 + $0x400] sm:$0xff] %v623_v2  ;;  %v626_v11 = vmax.f32 %v338_v8, %v482_v9  ;;  %v483_v13 = vld [vmem:[%s1291_s29 + $0x420] sm:$0xff]  ;;  %v340_v14 = vld [vmem:[%s1284_s28 + $0x428] sm:$0xff]  ;;  %v341_v17 = vld [vmem:[%s1284_s28 + $0x430] sm:$0xff] }
  0xba   : > { %768 = vst [vmem:[%s1306_s19 + $0x408] sm:$0xff] %v624_v6  ;;  %v627_v15 = vmax.f32 %v339_v12, %v483_v13  ;;  %v484_v16 = vld [vmem:[%s1291_s29 + $0x428] sm:$0xff]  ;;  %v485_v18 = vld [vmem:[%s1291_s29 + $0x430] sm:$0xff]  ;;  %769 = vst [vmem:[%s1306_s19 + $0x410] sm:$0xff] %v625_v10 }
  0xbb   : > { %770 = vst [vmem:[%s1306_s19 + $0x418] sm:$0xff] %v626_v11  ;;  %v628_v19 = vmax.f32 %v340_v14, %v484_v16  ;;  %v629_v20 = vmax.f32 %v341_v17, %v485_v18  ;;  %v342_v21 = vld [vmem:[%s1284_s28 + $0x438] sm:$0xff]  ;;  %v343_v23 = vld [vmem:[%s1284_s28 + $0x440] sm:$0xff]  ;;  %v344_v26 = vld [vmem:[%s1284_s28 + $0x448] sm:$0xff] }
  0xbc   : > { %v486_v22 = vld [vmem:[%s1291_s29 + $0x438] sm:$0xff]  ;;  %771 = vst [vmem:[%s1306_s19 + $0x420] sm:$0xff] %v627_v15  ;;  %v487_v25 = vld [vmem:[%s1291_s29 + $0x440] sm:$0xff]  ;;  %v488_v27 = vld [vmem:[%s1291_s29 + $0x448] sm:$0xff] }
  0xbd   : > { %v630_v24 = vmax.f32 %v342_v21, %v486_v22  ;;  %772 = vst [vmem:[%s1306_s19 + $0x428] sm:$0xff] %v628_v19  ;;  %773 = vst [vmem:[%s1306_s19 + $0x430] sm:$0xff] %v629_v20  ;;  %v631_v28 = vmax.f32 %v343_v23, %v487_v25  ;;  %v632_v29 = vmax.f32 %v344_v26, %v488_v27  ;;  %v345_v30 = vld [vmem:[%s1284_s28 + $0x450] sm:$0xff]  ;;  %v346_v32 = vld [vmem:[%s1284_s28 + $0x458] sm:$0xff] }
  0xbe   : > { %v489_v31 = vld [vmem:[%s1291_s29 + $0x450] sm:$0xff]  ;;  %v490_v34 = vld [vmem:[%s1291_s29 + $0x458] sm:$0xff]  ;;  %v347_v35 = vld [vmem:[%s1284_s28 + $0x460] sm:$0xff] }
  0xbf   : > { %774 = vst [vmem:[%s1306_s19 + $0x438] sm:$0xff] %v630_v24  ;;  %v633_v33 = vmax.f32 %v345_v30, %v489_v31  ;;  %v491_v36 = vld [vmem:[%s1291_s29 + $0x460] sm:$0xff]  ;;  %775 = vst [vmem:[%s1306_s19 + $0x440] sm:$0xff] %v631_v28  ;;  %v634_v37 = vmax.f32 %v346_v32, %v490_v34  ;;  %v348_v39 = vld [vmem:[%s1284_s28 + $0x468] sm:$0xff] }
  0xc0   : > { %776 = vst [vmem:[%s1306_s19 + $0x448] sm:$0xff] %v632_v29  ;;  %v635_v38 = vmax.f32 %v347_v35, %v491_v36  ;;  %v492_v40 = vld [vmem:[%s1291_s29 + $0x468] sm:$0xff]  ;;  %v349_v41 = vld [vmem:[%s1284_s28 + $0x470] sm:$0xff]  ;;  %v350_v44 = vld [vmem:[%s1284_s28 + $0x478] sm:$0xff] }
  0xc1   : > { %777 = vst [vmem:[%s1306_s19 + $0x450] sm:$0xff] %v633_v33  ;;  %v636_v42 = vmax.f32 %v348_v39, %v492_v40  ;;  %v493_v43 = vld [vmem:[%s1291_s29 + $0x470] sm:$0xff]  ;;  %v494_v45 = vld [vmem:[%s1291_s29 + $0x478] sm:$0xff]  ;;  %778 = vst [vmem:[%s1306_s19 + $0x458] sm:$0xff] %v634_v37 }
  0xc2   : > { %779 = vst [vmem:[%s1306_s19 + $0x460] sm:$0xff] %v635_v38  ;;  %v637_v46 = vmax.f32 %v349_v41, %v493_v43  ;;  %v638_v47 = vmax.f32 %v350_v44, %v494_v45 }
  0xc3   : > { %780 = vst [vmem:[%s1306_s19 + $0x468] sm:$0xff] %v636_v42 }
  0xc4   : > { %781 = vst [vmem:[%s1306_s19 + $0x470] sm:$0xff] %v637_v46  ;;  %782 = vst [vmem:[%s1306_s19 + $0x478] sm:$0xff] %v638_v47 }
  0xc5   : > { %1046 = shalt.err (!%p1043_p11)
}
  0xc6   : > { %s1047_s6 = scalar_lea.hbm %s1735_s16, 18432  ;;  %s1051_s3 = scalar_lea.hbm %s1783_s2, 147456 }
  0xc7   : > { %p1048_p7 = scmp.ne.s32.totalorder %s1735_s16, %s1047_s6  ;;  %p1052_p1 = scmp.lt.u32.totalorder %s1735_s16, %s1783_s2 }
  0xc8   : > { %p1053_p3 = scmp.lt.u32.totalorder %s1051_s3, %s1047_s6  ;;  %p1055_p12 = scmp.lt.u32.totalorder %s1047_s6, %s1735_s16 }
  0xc9   : > { %p1049_p8 = pnand %p1048_p7, %p1792_p0 }
  0xca   : > { %p1054_p6 = por %p1053_p3, %p1052_p1 }
  0xcb   : > { %p1050_p13 = pneg %p1049_p8 }
  0xcc   : > { %p1056_p2 = por %p1055_p12, %p1054_p6 }
  0xce   : > { %p1057_p9 = pnand %p1056_p2, %p1050_p13 }
  0xd0   : > { %1060 = shalt.err (!%p1057_p9)
}
  0xd1   : > { %s1110_s22 = smov 512   ;;  %s1111_s29 = smov 32  }
  0xd2   : > { %922 = dma.vmem_to_hbm [thread:$0]  (%p1792_p0), %s1728_s5, 18432, %s1735_s16, %s784_s27, %s1110_s22, %s1110_s22, %s1111_s29  }
  0xd3 PF: > { %p936_p4 = scmp.ge.s32.totalorder %s1103_s12, 2  ;;  %s813_s19 = sand.u32 1, %s1091_s9  }
  0xd4   : > { %p1793_p5 = scmp.ne.s32.totalorder %s1788_s21, 0  ;;  %s814_s4 = scalar_lea.sflag [#allocation4], %s813_s19 }
  0xd6   : > { %p932_p10 = pnand %p936_p4, %p1793_p5 }
  0xd8   : > { %1086 = dma.done.wait (!%p932_p10), %s814_s4, 18432  }
  0xd9   : > { %1088 = vsyncadd (!%p932_p10), %s814_s4, 4294948864  ;;  %p18_p11 = scmp.ge.s32.totalorder %s1152_s15, 10   ;;  %s1794_s9 = smov %s1095_s10 }
  0xda   : > { %s1795_s10 = smov %s1099_s11  ;;  %s1796_s11 = smov %s1164_s18 }
  0xdb   : > { %s1797_s12 = smov %s1152_s15  ;;  %20 = sbr.rel (!%p18_p11) target bundleno = 7 (0x7), region = 86 }
  0xe2   :  { %819 = vsyncpa [#allocation3], 1 }
  0xe3   :  { %821 = vsyncpa [#allocation3 + $0x1], 1 }
  0xe4   :  { %822 = vsyncpa [#allocation6], 1 }
  0xe5   :  { %824 = vsyncpa [#allocation6 + $0x1], 1 }
  0xe6   :  { %825 = vsyncpa [#allocation4], 1 }
  0xe7   :  { %827 = vsyncpa [#allocation4 + $0x1], 1 }

</bundles_post_ra>
